<compile_context>
chip_gen: v7x
topology: tpu7x:2x2x1
jax: 0.10.0
libtpu: 0.0.40
codegen_flags: <defaults>
</compile_context>

<pallas_src>
import functools

import jax
import jax.numpy as jnp
import numpy as np
from jax.experimental import pallas as pl
from jax.experimental.pallas import tpu as pltpu


def mlp_kernel(x_ref, wt_ref, o_ref, std_ref, stop_ref):
    """One layer per grid step: Linear(no bias) + ReLU + unbiased std.

    x_ref:    (B, N)   f32       VMEM, resident (constant block index)
    wt_ref:   (N, N)   f32/bf16  VMEM, layer l's W.T (auto double-buffered)
    o_ref:    (B, N)   f32       VMEM, resident; activation carry across layers
    std_ref:  (L,)     f32       SMEM, resident; per-layer torch.std()
    stop_ref: (1,)     i32       SMEM scratch; set once a layer's std is NaN
    """
    l = pl.program_id(0)

    @pl.when(l == 0)
    def _init():
        stop_ref[0] = 0
        # Seed the activation carry: one tiny (B, N) copy at step 0 only.
        o_ref[...] = x_ref[...]

    stopped = stop_ref[0] != 0

    @pl.when(jnp.logical_not(stopped))
    def _layer():
        # MXU matmul with f32 accumulation; bf16 inputs feed the MXU natively.
        a = o_ref[...].astype(wt_ref.dtype)
        y = jnp.dot(a, wt_ref[...], preferred_element_type=jnp.float32)
        y = jnp.maximum(y, 0.0)  # ReLU (VPU)
        o_ref[...] = y

        # torch.std(): unbiased (ddof=1) over all elements, single pass.
        n_elems = o_ref.shape[0] * o_ref.shape[1]
        inv_n = 1.0 / n_elems          # trace-time constants
        inv_nm1 = 1.0 / (n_elems - 1)
        s = jnp.sum(y)                 # XLU reductions
        sq = jnp.sum(y * y)
        var = (sq - s * s * inv_n) * inv_nm1
        var = jnp.maximum(var, 0.0)    # clamp rounding noise; NaN still propagates
        std = jnp.sqrt(var)            # EUP
        std_ref[l] = std

        # PyTorch breaks out of the layer loop when std is NaN: gate later layers.
        @pl.when(jnp.isnan(std))
        def _stop():
            stop_ref[0] = 1

    @pl.when(stopped)
    def _skipped():
        # Layers PyTorch never reached report NaN (host loop breaks at first NaN).
        std_ref[l] = jnp.float32(jnp.nan)


@functools.partial(jax.jit, static_argnames=("compute_dtype",))
def mlp_forward(x, w, compute_dtype=jnp.float32):
    """x: (B, N) f32. w: (L, N, N) in PyTorch layout (out_features, in_features)."""
    batch, n = x.shape
    layers = w.shape[0]
    # Pre-transpose once so the kernel does a plain a @ W.T. Optional bf16 cast
    # (compute_dtype=jnp.bfloat16) halves the per-layer weight DMA.
    w_t = jnp.transpose(w, (0, 2, 1)).astype(compute_dtype)

    out, stds = pl.pallas_call(
        mlp_kernel,
        out_shape=(
            jax.ShapeDtypeStruct((batch, n), jnp.float32),
            jax.ShapeDtypeStruct((layers,), jnp.float32),
        ),
        grid_spec=pltpu.PrefetchScalarGridSpec(
            num_scalar_prefetch=0,
            grid=(layers,),
            in_specs=[
                # x: resident for the whole grid (DMA'd once, constant block).
                pl.BlockSpec((batch, n), lambda l: (0, 0)),
                # weights: one (N, N) layer slice per grid step; Pallas
                # double-buffers so layer l+1's DMA overlaps layer l's matmul.
                pl.BlockSpec((None, n, n), lambda l: (l, 0, 0)),
            ],
            out_specs=(
                # activation carry: same block every step -> resident accumulator.
                pl.BlockSpec((batch, n), lambda l: (0, 0)),
                # per-layer stds: resident in SMEM, written back at the end.
                pl.BlockSpec((layers,), lambda l: (0,), memory_space=pltpu.SMEM),
            ),
            scratch_shapes=[pltpu.SMEM((1,), jnp.int32)],
        ),
        compiler_params=pltpu.CompilerParams(
            # Layer axis is a serial carry chain.
            dimension_semantics=("arbitrary",),
        ),
    )(x, w_t)
    return out, stds


def mlp_reference(x, w):
    """Pure-JAX reference (no NaN early-exit; fine for the small demo)."""
    a = x
    stds = []
    for l in range(w.shape[0]):
        a = jnp.maximum(a @ w[l].T, 0.0)
        stds.append(jnp.std(a, ddof=1))
    return a, jnp.stack(stds)


def init_weights(key, neural_num, layers):
    """kaiming_normal_(nonlinearity='relu'): std = sqrt(2 / fan_in), layout (out, in)."""
    std = (2.0 / neural_num) ** 0.5
    return jax.random.normal(key, (layers, neural_num, neural_num), jnp.float32) * std


if __name__ == "__main__":
    neural_num = 128   # feature width: lane-dim (128) friendly
    layers = 4
    batch = 8          # sublane (8) friendly

    key = jax.random.PRNGKey(0)
    k_w, k_x = jax.random.split(key)

    w = init_weights(k_w, neural_num, layers)                    # (L, out, in)
    x = jax.random.normal(k_x, (batch, neural_num), jnp.float32)

    out, stds = mlp_forward(x, w)
    out = jax.block_until_ready(out)
    stds = jax.block_until_ready(stds)

    # Correctness check against the pure-JAX reference.
    ref_out, ref_stds = mlp_reference(x, w)
    np.testing.assert_allclose(np.asarray(out), np.asarray(ref_out),
                               rtol=1e-5, atol=1e-5)
    np.testing.assert_allclose(np.asarray(stds), np.asarray(ref_stds),
                               rtol=1e-5, atol=1e-6)

    for i in range(layers):
        print("layer:{}, std:{}".format(i, float(stds[i])))
        if bool(jnp.isnan(stds[i])):
            print("output is nan in {} layers".format(i))
            break

    print("KERNEL_OK")
</pallas_src>

<mosaic_0001>
module attributes {stable_mosaic.version = 11 : i64} {
  func.func @mlp_kernel(%arg0: i32, %arg1: memref<8x128xf32, #tpu.memory_space<vmem>>, %arg2: memref<1x128x128xf32, #tpu.memory_space<vmem>>, %arg3: memref<8x128xf32, #tpu.memory_space<vmem>>, %arg4: memref<4xf32, #tpu.memory_space<smem>>, %arg5: memref<1xi32, #tpu.memory_space<smem>>) attributes {dimension_semantics = [#tpu.dimension_semantics<arbitrary>], iteration_bounds = array<i64: 4>, scalar_prefetch = 0 : i64, scratch_operands = 1 : i64, tpu.core_type = #tpu.core_type<tc>, window_params = [{pipeline_mode = #tpu.pipeline_mode<synchronous>, transform_indices = @transform_0, window_bounds = array<i64: 8, 128>}, {transform_indices = @transform_1, window_bounds = array<i64: 1, 128, 128>}, {pipeline_mode = #tpu.pipeline_mode<synchronous>, transform_indices = @transform_2, window_bounds = array<i64: 8, 128>}, {transform_indices = @transform_3, window_bounds = array<i64: 4>}]} {
    %c0_i32 = arith.constant 0 : i32
    %0 = arith.cmpi eq, %arg0, %c0_i32 : i32
    %1 = arith.extui %0 : i1 to i32
    %c0_i32_0 = arith.constant 0 : i32
    %2 = arith.cmpi ne, %1, %c0_i32_0 : i32
    scf.if %2 {
      %c0_i32_4 = arith.constant 0 : i32
      %c0_5 = arith.constant 0 : index
      %10 = memref.load %arg5[%c0_5] : memref<1xi32, #tpu.memory_space<smem>>
      memref.store %c0_i32_4, %arg5[%c0_5] : memref<1xi32, #tpu.memory_space<smem>>
      %c0_6 = arith.constant 0 : index
      %c0_7 = arith.constant 0 : index
      %11 = vector.load %arg1[%c0_6, %c0_7] : memref<8x128xf32, #tpu.memory_space<vmem>>, vector<8x128xf32>
      %c0_8 = arith.constant 0 : index
      %c0_9 = arith.constant 0 : index
      %12 = vector.load %arg3[%c0_8, %c0_9] : memref<8x128xf32, #tpu.memory_space<vmem>>, vector<8x128xf32>
      tpu.vector_store %arg3[%c0_8, %c0_9], %11 {strides = array<i32>} : memref<8x128xf32, #tpu.memory_space<vmem>>, vector<8x128xf32>,
    } else {
    }
    %c0 = arith.constant 0 : index
    %3 = memref.load %arg5[%c0] : memref<1xi32, #tpu.memory_space<smem>>
    %c0_i32_1 = arith.constant 0 : i32
    %4 = arith.cmpi ne, %3, %c0_i32_1 : i32
    %true = arith.constant true
    %5 = arith.xori %4, %true : i1
    %6 = arith.extui %5 : i1 to i32
    %c0_i32_2 = arith.constant 0 : i32
    %7 = arith.cmpi ne, %6, %c0_i32_2 : i32
    scf.if %7 {
      %c0_4 = arith.constant 0 : index
      %c0_5 = arith.constant 0 : index
      %10 = vector.load %arg3[%c0_4, %c0_5] : memref<8x128xf32, #tpu.memory_space<vmem>>, vector<8x128xf32>
      %c0_6 = arith.constant 0 : index
      %c0_7 = arith.constant 0 : index
      %c0_8 = arith.constant 0 : index
      %11 = vector.load %arg2[%c0_6, %c0_7, %c0_8] : memref<1x128x128xf32, #tpu.memory_space<vmem>>, vector<1x128x128xf32>
      %12 = vector.shape_cast %11 : vector<1x128x128xf32> to vector<128x128xf32>
      %cst = arith.constant dense<0.000000e+00> : vector<8x128xf32>
      %13 = tpu.matmul %10, %12, %cst {dimension_numbers = #tpu.dot_dimension_numbers<[1], [0], [0], [1], [0, 0, 1, 1], [], []>} : vector<8x128xf32>, vector<128x128xf32>, vector<8x128xf32> -> vector<8x128xf32>
      %cst_9 = arith.constant 0.000000e+00 : f32
      %14 = vector.broadcast %cst_9 : f32 to vector<8x128xf32>
      %15 = arith.maximumf %13, %14 : vector<8x128xf32>
      %c0_10 = arith.constant 0 : index
      %c0_11 = arith.constant 0 : index
      %16 = vector.load %arg3[%c0_10, %c0_11] : memref<8x128xf32, #tpu.memory_space<vmem>>, vector<8x128xf32>
      tpu.vector_store %arg3[%c0_10, %c0_11], %15 {strides = array<i32>} : memref<8x128xf32, #tpu.memory_space<vmem>>, vector<8x128xf32>,
      %17 = vector.shape_cast %15 : vector<8x128xf32> to vector<1x8x128xf32>
      %cst_12 = arith.constant dense<0.000000e+00> : vector<1xf32>
      %18 = vector.multi_reduction <add>, %17, %cst_12 [1, 2] : vector<1x8x128xf32> to vector<1xf32>
      %19 = vector.shape_cast %18 : vector<1xf32> to vector<1x1x1xf32>
      %20 = vector.extract %19[0, 0, 0] : f32 from vector<1x1x1xf32>
      %21 = arith.mulf %15, %15 : vector<8x128xf32>
      %22 = vector.shape_cast %21 : vector<8x128xf32> to vector<1x8x128xf32>
      %cst_13 = arith.constant dense<0.000000e+00> : vector<1xf32>
      %23 = vector.multi_reduction <add>, %22, %cst_13 [1, 2] : vector<1x8x128xf32> to vector<1xf32>
      %24 = vector.shape_cast %23 : vector<1xf32> to vector<1x1x1xf32>
      %25 = vector.extract %24[0, 0, 0] : f32 from vector<1x1x1xf32>
      %26 = arith.mulf %20, %20 : f32
      %cst_14 = arith.constant 9.765625E-4 : f32
      %27 = arith.mulf %26, %cst_14 : f32
      %28 = arith.subf %25, %27 : f32
      %cst_15 = arith.constant 9.77517105E-4 : f32
      %29 = arith.mulf %28, %cst_15 : f32
      %cst_16 = arith.constant 0.000000e+00 : f32
      %30 = arith.maximumf %29, %cst_16 : f32
      %31 = math.sqrt %30 : f32
      %32 = arith.index_cast %arg0 : i32 to index
      %33 = memref.load %arg4[%32] : memref<4xf32, #tpu.memory_space<smem>>
      memref.store %31, %arg4[%32] : memref<4xf32, #tpu.memory_space<smem>>
      %34 = arith.cmpf one, %31, %31 : f32
      %35 = arith.extui %34 : i1 to i32
      %c0_i32_17 = arith.constant 0 : i32
      %36 = arith.cmpi ne, %35, %c0_i32_17 : i32
      scf.if %36 {
        %c1_i32 = arith.constant 1 : i32
        %c0_18 = arith.constant 0 : index
        %37 = memref.load %arg5[%c0_18] : memref<1xi32, #tpu.memory_space<smem>>
        memref.store %c1_i32, %arg5[%c0_18] : memref<1xi32, #tpu.memory_space<smem>>
      } else {
      }
    } else {
    }
    %8 = arith.extui %4 : i1 to i32
    %c0_i32_3 = arith.constant 0 : i32
    %9 = arith.cmpi ne, %8, %c0_i32_3 : i32
    scf.if %9 {
      %cst = arith.constant 0x7FC00000 : f32
      %10 = arith.index_cast %arg0 : i32 to index
      %11 = memref.load %arg4[%10] : memref<4xf32, #tpu.memory_space<smem>>
      memref.store %cst, %arg4[%10] : memref<4xf32, #tpu.memory_space<smem>>
    } else {
    }
    return
  }
  func.func @transform_0(%arg0: i32) -> (i32, i32) {
    %c0_i32 = arith.constant 0 : i32
    %c0_i32_0 = arith.constant 0 : i32
    %c0_i32_1 = arith.constant 0 : i32
    return %c0_i32, %c0_i32_0 : i32, i32
  }
  func.func @transform_1(%arg0: i32) -> (i32, i32, i32) {
    %c0_i32 = arith.constant 0 : i32
    %c0_i32_0 = arith.constant 0 : i32
    %c0_i32_1 = arith.constant 0 : i32
    return %arg0, %c0_i32, %c0_i32_0 : i32, i32, i32
  }
  func.func @transform_2(%arg0: i32) -> (i32, i32) {
    %c0_i32 = arith.constant 0 : i32
    %c0_i32_0 = arith.constant 0 : i32
    %c0_i32_1 = arith.constant 0 : i32
    return %c0_i32, %c0_i32_0 : i32, i32
  }
  func.func @transform_3(%arg0: i32) -> i32 {
    %c0_i32 = arith.constant 0 : i32
    %c0_i32_0 = arith.constant 0 : i32
    return %c0_i32 : i32
  }
}

</mosaic_0001>

<bundles_post_ra>
// kernel: mlp_forward.1
= control target key start
LH: loop header
LB: loop body
LE: loop exit
PB: predicated region body
PF: predicated region fallthrough
CT: control target
= control target key end

     0   :  { %9 = vsyncpa [#allocation4], 0  ;;  %s690_s0 = inlined_call_operand.vmem [shape: f32[8,128], index: 0, kind: input, shape index: {}]   ;;  %s691_s1 = inlined_call_operand.vmem [shape: f32[4,128,128], index: 1, kind: input, shape index: {}]   ;;  %s692_s2 = inlined_call_operand.hbm [shape: f32[8,128], index: 2, kind: output, shape index: {0}]   ;;  %s693_s3 = inlined_call_operand.hbm [shape: f32[4], index: 3, kind: output, shape index: {1}]  }
   0x1   :  { %10 = vsyncpa [#allocation5], 0  ;;  %s598_s12 = smov 0  }
   0x2 LB: > { %s604_s13 = sadd.s32 4294967295, %s567_s12   ;;  %p379_p0 = scmp.ge.s32.totalorder %s567_s12, 1  ;;  %s567_s12 = sphi %s598_s12, %s16_s12  }
   0x3   : > { %p132_p1 = scmp.lt.s32.totalorder %s567_s12, 5 }
   0x5   : > { %p133_p2 = pnand %p379_p0, %p132_p1 }
   0x6   : > { %p151_p3 = scmp.lt.s32.totalorder (!%p133_p2), %s604_s13, 3  ;;  %p382_p4 = scmp.ne.s32.totalorder (!%p133_p2), %s604_s13, 0 }
   0x7   : > { %136 = sbr.rel (%p133_p2) target bundleno = 599 (0x257), region = 28 }
   0xe   : > { %s152_s14 = scalar_select %p151_p3, %s604_s13, 3 }
   0xf   : > { %159 = sbr.rel (%p382_p4) target bundleno = 22 (0x16), region = 32  ;;  %v162_v0 = vld [vmem:[%s690_s0] sm:$0xff] (!%p382_p4)  ;;  %s569_s21 = smov (!%p382_p4), 0  }
  0x10   : > { %s393_s15 = sshll.u32 %s152_s14, 7  ;;  %161 = sst [smem:[#allocation2]] (!%p382_p4), %s569_s21  ;;  %163 = vst [vmem:[#allocation3] sm:$0xff] (!%p382_p4), %v162_v0 }
  0x11   : > { %s613_s18 = scalar_lea.vmem %s691_s1, %s393_s15 }
  0x16 PF: > { %s619_s22 = sld [smem:[#allocation2]] }
  0x1c   : > { %p383_p5 = scmp.ne.s32.totalorder %s619_s22, 0 }
  0x1d   : > { %v171_v1 = vld [vmem:[%s613_s18] sm:$0xff] (!%p383_p5)  ;;  %v172_v2 = vld [vmem:[%s613_s18 + $0x8] sm:$0xff] (!%p383_p5)  ;;  %v173_v3 = vld [vmem:[%s613_s18 + $0x10] sm:$0xff] (!%p383_p5)  ;;  %v570_v4 = vmov (!%p383_p5), 0.0|0.0   ;;  %vm571_vm0 = vmmov (!%p383_p5), 0   ;;  %v572_v7 = vmov (!%p383_p5), 0.0  }
  0x1e   : > { %169 = sbr.rel (%p383_p5) target bundleno = 559 (0x22f), region = 36  ;;  %450 = vmatprep.subr.bf16.mxu0 (!%p383_p5), %v570_v4  ;;  %v451_v5 = vpack.c.bf16 (!%p383_p5), %v172_v2, %v171_v1  ;;  %v174_v6 = vld [vmem:[%s613_s18 + $0x18] sm:$0xff] (!%p383_p5)  ;;  %447 = vmatprep.mubr.msk.f32.mxu0 (!%p383_p5), %vm571_vm0, %v572_v7  ;;  %v175_v9 = vld [vmem:[%s613_s18 + $0x20] sm:$0xff] (!%p383_p5)  ;;  %v176_v10 = vld [vmem:[%s613_s18 + $0x28] sm:$0xff] (!%p383_p5)  ;;  %s573_s29 = smov (!%p383_p5), 0.0  }
  0x1f   : > { %v454_v8 = vpack.c.bf16 (!%p383_p5), %v174_v6, %v173_v3  ;;  %v457_v11 = vpack.c.bf16 (!%p383_p5), %v176_v10, %v175_v9  ;;  %v177_v12 = vld [vmem:[%s613_s18 + $0x30] sm:$0xff] (!%p383_p5)  ;;  %v178_v13 = vld [vmem:[%s613_s18 + $0x38] sm:$0xff] (!%p383_p5)  ;;  %v179_v15 = vld [vmem:[%s613_s18 + $0x40] sm:$0xff] (!%p383_p5)  ;;  %s394_s4 = scalar_lea.smem (!%p383_p5), [#allocation6], %s567_s12  ;;  %s574_s7 = smov (!%p383_p5), 1  }
  0x20   : > { %452 = vmatpush3.bf16.msra.mxu0 (!%p383_p5), %v451_v5  ;;  %v460_v14 = vpack.c.bf16 (!%p383_p5), %v178_v13, %v177_v12  ;;  %v180_v16 = vld [vmem:[%s613_s18 + $0x48] sm:$0xff] (!%p383_p5)  ;;  %v181_v18 = vld [vmem:[%s613_s18 + $0x50] sm:$0xff] (!%p383_p5)  ;;  %v182_v19 = vld [vmem:[%s613_s18 + $0x58] sm:$0xff] (!%p383_p5)  ;;  %s395_s5 = scalar_lea.smem (!%p383_p5), %s394_s4, 4294967295 [#allocation6] }
  0x21   : > { %453 = vmatprep.subr.bf16.mxu0 (!%p383_p5), %v570_v4  ;;  %v463_v17 = vpack.c.bf16 (!%p383_p5), %v180_v16, %v179_v15  ;;  %v466_v20 = vpack.c.bf16 (!%p383_p5), %v182_v19, %v181_v18  ;;  %v183_v21 = vld [vmem:[%s613_s18 + $0x60] sm:$0xff] (!%p383_p5)  ;;  %v184_v22 = vld [vmem:[%s613_s18 + $0x68] sm:$0xff] (!%p383_p5)  ;;  %v185_v24 = vld [vmem:[%s613_s18 + $0x70] sm:$0xff] (!%p383_p5) }
  0x22   : > { %v469_v23 = vpack.c.bf16 (!%p383_p5), %v184_v22, %v183_v21  ;;  %v186_v25 = vld [vmem:[%s613_s18 + $0x78] sm:$0xff] (!%p383_p5)  ;;  %v170_v27 = vld [vmem:[#allocation3] sm:$0xff] (!%p383_p5) }
  0x23   : > { %v472_v26 = vpack.c.bf16 (!%p383_p5), %v186_v25, %v185_v24 }
  0x24   : > { %455 = vmatpush3.bf16.msra.mxu0 (!%p383_p5), %v454_v8 }
  0x25   : > { %456 = vmatprep.subr.bf16.mxu0 %v570_v4 }
  0x28   : > { %458 = vmatpush3.bf16.msra.mxu0 %v457_v11 }
  0x29   : > { %459 = vmatprep.subr.bf16.mxu0 %v570_v4 }
  0x2c   : > { %461 = vmatpush3.bf16.msra.mxu0 %v460_v14 }
  0x2d   : > { %462 = vmatprep.subr.bf16.mxu0 %v570_v4 }
  0x30   : > { %464 = vmatpush3.bf16.msra.mxu0 %v463_v17 }
  0x31   : > { %465 = vmatprep.subr.bf16.mxu0 %v570_v4 }
  0x34   : > { %467 = vmatpush3.bf16.msra.mxu0 %v466_v20 }
  0x35   : > { %468 = vmatprep.subr.bf16.mxu0 %v570_v4 }
  0x38   : > { %470 = vmatpush3.bf16.msra.mxu0 %v469_v23 }
  0x39   : > { %471 = vmatprep.subr.bf16.mxu0 %v570_v4 }
  0x3c   : > { %473 = vmatpush3.bf16.msra.mxu0 %v472_v26 }
  0x3f   : > { %448 = vmatmul.mubr.f32.vlgmr.msra.gmra.mrb[0].mxu0 %v170_v27 }
 0x112   : > { %v253_v28 = vpop.f32.mrb[0].mxu0 }
 0x113   : > { %v257_v29 = vmax.f32 %v253_v28, 0.0  ;;  %v449_v30 = vpop.f32.mrb[1].mxu0 }
 0x115   : > { %258 = vst [vmem:[#allocation3] sm:$0xff] %v257_v29  ;;  %259 = vadd.xlane.f32.xlu0 %v257_v29  ;;  %v268_v31 = vmul.f32 %v257_v29, %v257_v29 }
 0x119   : > { %269 = vadd.xlane.f32.xlu0 %v268_v31 }
 0x1a2   : > { %v260_v32 = vpop.xlane.xlu0 %259 }
 0x1a3   : > { %v261_v33 = vrot.slane %v260_v32, 4 }
 0x1a5   : > { %v262_v34 = vadd.f32 %v261_v33, %v260_v32 }
 0x1a6   : > { %v270_v35 = vpop.xlane.xlu0 %269 }
 0x1a7   : > { %v263_v36 = vrot.slane %v262_v34, 2  ;;  %v271_v37 = vrot.slane %v270_v35, 4 }
 0x1a9   : > { %v272_v38 = vadd.f32 %v271_v37, %v270_v35  ;;  %v264_v39 = vadd.f32 %v263_v36, %v262_v34 }
 0x1ab   : > { %v273_v40 = vrot.slane %v272_v38, 2  ;;  %v265_v41 = vrot.slane %v264_v39, 1 }
 0x1ad   : > { %v274_v42 = vadd.f32 %v273_v40, %v272_v38  ;;  %v266_v43 = vadd.f32 %v265_v41, %v264_v39 }
 0x1af   : > { %474 = vpush %v266_v43  ;;  %v275_v44 = vrot.slane %v274_v42, 1 }
 0x1b1   : > { %v276_v45 = vadd.f32 %v275_v44, %v274_v42 }
 0x1b3   : > { %476 = vpush %v276_v45 }
 0x1e0   : > { %s475_s23 = spop %474 }
 0x1e1   : > { %s278_s24 = smul.f32 %s475_s23, %s475_s23 }
 0x1e3   : > { %s279_s25 = smul.f32 0.0009765625, %s278_s24 }
 0x1e4   : > { %s477_s26 = spop %476 }
 0x1e5   : > { %s280_s27 = ssub.f32 %s477_s26, %s279_s25 }
 0x1e7   : > { %s281_s28 = smul.f32 0.0009775171, %s280_s27 }
 0x1e9   : > { %s282_s30 = smax.f32 %s573_s29, %s281_s28 }
 0x1ea   : > { %v283_v46 = vstv %s282_s30 }
 0x1eb   : > { %513 = vrsqrt.f32 %v283_v46  ;;  %vm286_vm1 = vcmp.eq.f32.partialorder %v283_v46, inf  ;;  %v289_v49 = vand.u32 2147483648, %v283_v46  ;;  %vm288_vm2 = vcmp.eq.f32.partialorder %v283_v46, 0.0 }
 0x1f5   : > { %v514_v47 = vpop.eup %513 }
 0x1f6   : > { %v285_v48 = vmul.f32 %v514_v47, %v283_v46 }
 0x1f8   : > { %v287_v50 = vsel %vm286_vm1, %v283_v46, %v285_v48 }
 0x1f9   : > { %v290_v51 = vsel %vm288_vm2, %v289_v49, %v287_v50 }
 0x1fa   : > { %478 = vpush %v290_v51 }
 0x22b   : > { %s479_s6 = spop %478 }
 0x22c   : > { %293 = sst [smem:[%s395_s5]] %s479_s6  ;;  %p294_p6 = scmp.ne.f32.partialorder %s479_s6, %s479_s6 }
 0x22e   : > { %480 = sst [smem:[#allocation2]] (%p294_p6), %s574_s7 }
 0x22f PF: > { %p492_p7 = scmp.eq.s32.totalorder %s604_s13, 3  ;;  %s575_s8 = smov [#allocation3]  }
 0x230   : > { %s312_s9 = sshll.u32 %s575_s8, 4  ;;  %s396_s10 = scalar_lea.smem [#allocation6], %s567_s12  ;;  %s313_s9 = int_to_ptr.vmem [resolvable:$true] %s312_s9 }
 0x231   : > { %s397_s11 = scalar_lea.smem %s396_s10, 4294967295 [#allocation6]  ;;  %s515_s14 = scalar_lea.vmem %s313_s9, 128 }
 0x232   : > { %p516_p8 = scmp.ne.s32.totalorder %s313_s9, %s515_s14  ;;  %p522_p11 = scmp.lt.s32.totalorder %s313_s9, %s313_s9 }
 0x233   : > { %p523_p12 = scmp.lt.s32.totalorder %s515_s14, %s515_s14 }
 0x234   : > { %p517_p9 = pnand %p516_p8, %p492_p7 }
 0x235   : > { %p524_p13 = por %p523_p12, %p522_p11 }
 0x236   : > { %p518_p10 = pneg %p517_p9 }
 0x238   : > { %p525_p0 = pnand %p524_p13, %p518_p10 }
 0x23a   : > { %528 = shalt.err (!%p525_p0)
}
 0x23b   : > { %s529_s17 = scalar_lea.hbm %s692_s2, 128 }
 0x23c   : > { %p530_p1 = scmp.ne.s32.totalorder %s692_s2, %s529_s17  ;;  %p535_p4 = scmp.lt.u32.totalorder %s529_s17, %s692_s2 }
 0x23e   : > { %p531_p2 = pnand %p530_p1, %p492_p7 }
 0x240   : > { %p532_p3 = pneg %p531_p2 }
 0x242   : > { %p537_p6 = pnand %p535_p4, %p532_p3 }
 0x244   : > { %540 = shalt.err (!%p537_p6)
}
 0x245   : > { %484 = dma.vmem_to_hbm [thread:$0]  (%p492_p7), %s313_s9, 128, %s692_s2, [#allocation4]  }
 0x246   : > { %s576_s25 = smov nan   ;;  %s541_s28 = scalar_lea.hbm %s693_s3, 16 }
 0x247   : > { %482 = sst [smem:[%s397_s11]] (%p383_p5), %s576_s25  ;;  %p542_p8 = scmp.ne.s32.totalorder %s693_s3, %s541_s28 }
 0x248   : > { %p547_p11 = scmp.lt.u32.totalorder %s541_s28, %s693_s3 }
 0x249   : > { %p543_p9 = pnand %p542_p8, %p492_p7 }
 0x24b   : > { %p544_p10 = pneg %p543_p9 }
 0x24d   : > { %p549_p12 = pnand %p547_p11, %p544_p10 }
 0x24f   : > { %552 = shalt.err (!%p549_p12)
}
 0x250   : > { %s577_s6 = smov [#allocation6]  }
 0x251   : > { %486 = dma.smem_to_hbm (%p492_p7), %s577_s6, 16, %s693_s3, [#allocation5]  }
 0x252   : > { %558 = dma.done.wait (%p492_p7), [#allocation4], 128  }
 0x253   : > { %560 = vsyncadd (%p492_p7), [#allocation4], 4294967168 }
 0x254   : > { %562 = dma.done.wait (%p492_p7), [#allocation5], 16  }
 0x255   : > { %564 = vsyncadd (%p492_p7), [#allocation5], 4294967280 }
 0x256   : > { %333 = sfence }
 0x257 PF: > { %s16_s12 = sadd.s32 1, %s567_s12  }
 0x258   : > { %p13_p5 = scmp.ge.s32.totalorder %s16_s12, 6  }
 0x25a   :  { %15 = sbr.rel (!%p13_p5) target bundleno = 2 (0x2), region = 84 }
 0x261   :  { %339 = vsyncpa [#allocation4], 1 }
 0x262   :  { %341 = vsyncpa [#allocation4 + $0x1], 1 }
 0x263   :  { %342 = vsyncpa [#allocation5], 1 }
 0x264   :  { %344 = vsyncpa [#allocation5 + $0x1], 1 }

</bundles_post_ra>
